<compile_context>
chip_gen: v7x
topology: tpu7x:2x2x1
jax: 0.10.0
libtpu: 0.0.40
codegen_flags: <defaults>
</compile_context>

<pallas_src>
import functools

import jax
import jax.numpy as jnp
from jax import lax
from jax.experimental import pallas as pl
from jax.experimental.pallas import tpu as pltpu


def _margin_loss_kernel(x_ref, out_ref, *, margin, num_batches):
    step = pl.program_id(0)

    x = x_ref[...]                                   # (TB, B, D), input dtype
    tb, bsz, _ = x.shape

    # Batched Gram matrices on the MXU; contraction is on the last dims of
    # both operands -> no explicit transpose of x.
    gram = jnp.einsum("bnd,bmd->bnm", x, x,
                      preferred_element_type=jnp.float32)        # (TB, B, B)

    xf = x.astype(jnp.float32)
    sqn = jnp.sum(xf * xf, axis=-1)                  # (TB, B)  |x_i|^2

    # dist_sq[b,i,j] = sqn[b,i] + sqn[b,j] - 2*gram[b,i,j].
    # Fold the row-constant sqn[b,i] out of the min over j.
    t = sqn[:, None, :] - 2.0 * gram                 # (TB, B, B)

    # Diagonal mask: built once, broadcast over all TB batches.
    row = lax.broadcasted_iota(jnp.int32, (bsz, bsz), 0)
    col = lax.broadcasted_iota(jnp.int32, (bsz, bsz), 1)
    t = jnp.where((row == col)[None, :, :], jnp.inf, t)

    row_min = jnp.min(t, axis=-1)                    # (TB, B)
    # Clamp Gram-trick cancellation; max(.,0) commutes with the min so this
    # matches the reference's nonnegative squared distances exactly.
    min_dist_sq = jnp.maximum(sqn + row_min, 0.0)    # (TB, B)

    hinge = jnp.maximum(jnp.float32(margin) ** 2 - min_dist_sq, 0.0)
    per_batch = jnp.mean(hinge, axis=-1, keepdims=True)          # (TB, 1)

    # Mask out padded batches (when num_batches % TB != 0).
    local = lax.broadcasted_iota(jnp.int32, (tb, 1), 0)
    valid = (step * tb + local) < num_batches
    per_batch = jnp.where(valid, per_batch, 0.0)

    partial = jnp.sum(per_batch)                     # sum of valid batch means
    # Lane-dense (1, 8, 128) per-step partial output (no shared accumulator).
    out_ref[...] = jnp.full(out_ref.shape, partial, dtype=out_ref.dtype)


def margin_loss(embeddings, margin=2.0, block_batches=None):
    """embeddings: (num_batches, batch_size, embedding_dim) -> scalar f32."""
    nb, bs, d = embeddings.shape
    itemsize = jnp.dtype(embeddings.dtype).itemsize

    if block_batches is None:
        # Per-batch VMEM cost: double-buffered input slab + a few f32 (B,B)
        # intermediates. Target ~8 MiB of TB-scaled buffers so the pipeline
        # stays well inside VMEM on v5e/v6e/v7x while issuing multi-MiB DMAs.
        per_batch_bytes = bs * d * itemsize * 2 + bs * bs * 4 * 3
        budget = 8 * 1024 * 1024
        block_batches = max(1, budget // max(per_batch_bytes, 1))
    tb = int(min(block_batches, nb))

    n_steps = pl.cdiv(nb, tb)
    nb_pad = n_steps * tb
    x = embeddings
    if nb_pad != nb:
        pad = jnp.zeros((nb_pad - nb, bs, d), dtype=embeddings.dtype)
        x = jnp.concatenate([embeddings, pad], axis=0)

    partials = pl.pallas_call(
        functools.partial(_margin_loss_kernel, margin=margin, num_batches=nb),
        out_shape=jax.ShapeDtypeStruct((n_steps, 8, 128), jnp.float32),
        grid_spec=pltpu.PrefetchScalarGridSpec(
            num_scalar_prefetch=0,
            grid=(n_steps,),
            in_specs=[pl.BlockSpec((tb, bs, d), lambda i: (i, 0, 0))],
            out_specs=pl.BlockSpec((1, 8, 128), lambda i: (i, 0, 0)),
        ),
        compiler_params=pltpu.CompilerParams(
            # Per-step partial outputs -> no carried accumulator -> the batch
            # axis can be sharded across TensorCores (v7x megacore).
            dimension_semantics=("parallel",),
            # Raise v5e's 16 MiB scoped default; leave headroom on v7x (64 MiB).
            vmem_limit_bytes=48 * 1024 * 1024,
        ),
    )(x)

    # Tiny final reduction in plain JAX: mean of per-batch means.
    return jnp.sum(partials[:, 0, 0]) / jnp.float32(nb)


def _margin_loss_ref(embeddings, margin=2.0):
    """Pure-JAX reference mirroring the PyTorch forward."""
    emb = embeddings.astype(jnp.float32)
    nb, bs, _ = emb.shape
    losses = []
    for i in range(nb):
        xi = emb[i]
        diff = xi[:, None, :] - xi[None, :, :]
        dist_sq = jnp.sum(diff * diff, axis=-1)
        dist_sq = jnp.where(jnp.eye(bs, dtype=bool), jnp.inf, dist_sq)
        min_dist_sq = jnp.min(dist_sq, axis=1, keepdims=True)
        loss = jnp.maximum(margin ** 2 - min_dist_sq, 0.0)
        losses.append(jnp.mean(loss))
    return jnp.mean(jnp.stack(losses))


if __name__ == "__main__":
    key = jax.random.PRNGKey(0)
    num_batches, batch_size, embedding_dim = 2, 8, 32
    # Scale down so some pairwise distances fall below margin^2 (non-trivial hinge).
    embeddings = 0.2 * jax.random.normal(
        key, (num_batches, batch_size, embedding_dim), dtype=jnp.float32)

    out = margin_loss(embeddings, margin=2.0)
    out = jax.block_until_ready(out)
    ref = _margin_loss_ref(embeddings, margin=2.0)
    assert jnp.allclose(out, ref, atol=1e-4, rtol=1e-4), (out, ref)

    # Second check: num_batches not divisible by the block size (exercises
    # padding + the per-step partial-output reduction).
    key2 = jax.random.PRNGKey(1)
    emb2 = 0.2 * jax.random.normal(key2, (3, batch_size, embedding_dim),
                                   dtype=jnp.float32)
    out2 = jax.block_until_ready(margin_loss(emb2, margin=2.0, block_batches=2))
    ref2 = _margin_loss_ref(emb2, margin=2.0)
    assert jnp.allclose(out2, ref2, atol=1e-4, rtol=1e-4), (out2, ref2)

    print("KERNEL_OK")
</pallas_src>

<mosaic_0001>
module attributes {stable_mosaic.version = 11 : i64} {
  func.func @_margin_loss_kernel(%arg0: i32, %arg1: memref<2x8x32xf32, #tpu.memory_space<vmem>>, %arg2: memref<1x8x128xf32, #tpu.memory_space<vmem>>) attributes {dimension_semantics = [#tpu.dimension_semantics<parallel>], iteration_bounds = array<i64: 1>, scalar_prefetch = 0 : i64, scratch_operands = 0 : i64, tpu.core_type = #tpu.core_type<tc>, window_params = [{transform_indices = @transform_0, window_bounds = array<i64: 2, 8, 32>}, {transform_indices = @transform_1, window_bounds = array<i64: 1, 8, 128>}]} {
    %c0 = arith.constant 0 : index
    %c0_0 = arith.constant 0 : index
    %c0_1 = arith.constant 0 : index
    %0 = vector.load %arg1[%c0, %c0_0, %c0_1] : memref<2x8x32xf32, #tpu.memory_space<vmem>>, vector<2x8x32xf32>
    "tpu.trace_start"() <{level = 10 : i32, message = "bnd,bmd->bnm"}> : () -> ()
    %cst = arith.constant dense<0.000000e+00> : vector<2x8x8xf32>
    %1 = tpu.matmul %0, %0, %cst {dimension_numbers = #tpu.dot_dimension_numbers<[2], [2], [1], [1], [0, 0, 0, 1, 1, 1], [0], [0]>} : vector<2x8x32xf32>, vector<2x8x32xf32>, vector<2x8x8xf32> -> vector<2x8x8xf32>
    "tpu.trace_stop"() : () -> ()
    %2 = arith.mulf %0, %0 : vector<2x8x32xf32>
    %cst_2 = arith.constant dense<0.000000e+00> : vector<2x8xf32>
    %3 = vector.multi_reduction <add>, %2, %cst_2 [2] : vector<2x8x32xf32> to vector<2x8xf32>
    %4 = vector.shape_cast %3 : vector<2x8xf32> to vector<2x1x8xf32>
    %cst_3 = arith.constant 2.000000e+00 : f32
    %5 = vector.broadcast %cst_3 : f32 to vector<2x8x8xf32>
    %6 = arith.mulf %5, %1 : vector<2x8x8xf32>
    %7 = vector.broadcast %4 : vector<2x1x8xf32> to vector<2x8x8xf32>
    %8 = arith.subf %7, %6 : vector<2x8x8xf32>
    %9 = tpu.iota {dimensions = array<i32: 0>} : vector<8x8xi32>
    %10 = tpu.iota {dimensions = array<i32: 1>} : vector<8x8xi32>
    %11 = arith.cmpi eq, %9, %10 : vector<8x8xi32>
    %12 = vector.shape_cast %11 : vector<8x8xi1> to vector<1x8x8xi1>
    %cst_4 = arith.constant 0x7F800000 : f32
    %13 = vector.shape_cast %12 : vector<1x8x8xi1> to vector<1x8x8xi1>
    %14 = vector.broadcast %13 : vector<1x8x8xi1> to vector<2x8x8xi1>
    %15 = vector.broadcast %cst_4 : f32 to vector<2x8x8xf32>
    %16 = arith.select %14, %15, %8 : vector<2x8x8xi1>, vector<2x8x8xf32>
    %cst_5 = arith.constant dense<0x7F800000> : vector<2x8xf32>
    %17 = vector.multi_reduction <minimumf>, %16, %cst_5 [2] : vector<2x8x8xf32> to vector<2x8xf32>
    %18 = arith.addf %3, %17 : vector<2x8xf32>
    %cst_6 = arith.constant 0.000000e+00 : f32
    %19 = vector.broadcast %cst_6 : f32 to vector<2x8xf32>
    %20 = arith.maximumf %18, %19 : vector<2x8xf32>
    %cst_7 = arith.constant 2.000000e+00 : f32
    %21 = arith.mulf %cst_7, %cst_7 : f32
    %22 = vector.broadcast %21 : f32 to vector<2x8xf32>
    %23 = arith.subf %22, %20 : vector<2x8xf32>
    %cst_8 = arith.constant 0.000000e+00 : f32
    %24 = vector.broadcast %cst_8 : f32 to vector<2x8xf32>
    %25 = arith.maximumf %23, %24 : vector<2x8xf32>
    %cst_9 = arith.constant dense<0.000000e+00> : vector<2xf32>
    %26 = vector.multi_reduction <add>, %25, %cst_9 [1] : vector<2x8xf32> to vector<2xf32>
    %27 = vector.shape_cast %26 : vector<2xf32> to vector<2x1xf32>
    %cst_10 = arith.constant 8.000000e+00 : f32
    %28 = vector.broadcast %cst_10 : f32 to vector<2x1xf32>
    %29 = arith.divf %27, %28 : vector<2x1xf32>
    %30 = tpu.iota {dimensions = array<i32: 0>} : vector<2x1xi32>
    %c2_i32 = arith.constant 2 : i32
    %31 = arith.muli %arg0, %c2_i32 : i32
    %32 = vector.broadcast %31 : i32 to vector<2x1xi32>
    %33 = arith.addi %32, %30 : vector<2x1xi32>
    %c2_i32_11 = arith.constant 2 : i32
    %34 = vector.broadcast %c2_i32_11 : i32 to vector<2x1xi32>
    %35 = arith.cmpi slt, %33, %34 : vector<2x1xi32>
    %cst_12 = arith.constant 0.000000e+00 : f32
    %36 = vector.broadcast %cst_12 : f32 to vector<2x1xf32>
    %37 = arith.select %35, %29, %36 : vector<2x1xi1>, vector<2x1xf32>
    %38 = vector.shape_cast %37 : vector<2x1xf32> to vector<1x2x1xf32>
    %cst_13 = arith.constant dense<0.000000e+00> : vector<1xf32>
    %39 = vector.multi_reduction <add>, %38, %cst_13 [1, 2] : vector<1x2x1xf32> to vector<1xf32>
    %40 = vector.shape_cast %39 : vector<1xf32> to vector<1x1x1xf32>
    %41 = vector.extract %40[0, 0, 0] : f32 from vector<1x1x1xf32>
    %42 = vector.broadcast %41 : f32 to vector<1x8x128xf32>
    %c0_14 = arith.constant 0 : index
    %c0_15 = arith.constant 0 : index
    %c0_16 = arith.constant 0 : index
    %43 = vector.load %arg2[%c0_14, %c0_15, %c0_16] : memref<1x8x128xf32, #tpu.memory_space<vmem>>, vector<1x8x128xf32>
    tpu.vector_store %arg2[%c0_14, %c0_15, %c0_16], %42 {strides = array<i32>} : memref<1x8x128xf32, #tpu.memory_space<vmem>>, vector<1x8x128xf32>,
    return
  }
  func.func @transform_0(%arg0: i32) -> (i32, i32, i32) {
    %c0_i32 = arith.constant 0 : i32
    %c0_i32_0 = arith.constant 0 : i32
    %c0_i32_1 = arith.constant 0 : i32
    return %arg0, %c0_i32, %c0_i32_0 : i32, i32, i32
  }
  func.func @transform_1(%arg0: i32) -> (i32, i32, i32) {
    %c0_i32 = arith.constant 0 : i32
    %c0_i32_0 = arith.constant 0 : i32
    %c0_i32_1 = arith.constant 0 : i32
    return %arg0, %c0_i32, %c0_i32_0 : i32, i32, i32
  }
}

</mosaic_0001>

<bundles_post_ra>
// kernel: tpu_custom_call.1
= control target key start
LH: loop header
LB: loop body
LE: loop exit
PB: predicated region body
PF: predicated region fallthrough
CT: control target
= control target key end

     0   :  { %6 = vsyncpa [#allocation3], 0  ;;  %s740_s0 = inlined_call_operand.hbm [shape: f32[2,8,32], index: 0, kind: input, shape index: {}]   ;;  %s741_s1 = inlined_call_operand.hbm [shape: f32[1,8,128], index: 1, kind: output, shape index: {}]  }
   0x1   :  { %7 = vsyncpa [#allocation4], 0  ;;  %s631_s6 = smov [#allocation2]   ;;  %s583_s10 = scalar_lea.hbm %s740_s0, 256 }
   0x2   :  { %s13_s7 = sshll.u32 %s631_s6, 4  ;;  %p584_p0 = scmp.ne.s32.totalorder %s740_s0, %s583_s10  ;;  %s14_s7 = int_to_ptr.vmem [resolvable:$true] %s13_s7 }
   0x3   :  { %p587_p1 = scmp.lt.u32.totalorder %s583_s10, %s740_s0 }
   0x5   :  { %p589_p2 = pnand %p587_p1, %p584_p0 }
   0x7   :  { %592 = shalt.err (!%p589_p2)
}
   0x8   :  { %s593_s15 = scalar_lea.vmem %s14_s7, 256  ;;  %p598_p4 = scmp.lt.s32.totalorder %s14_s7, %s14_s7 }
   0x9   :  { %p594_p3 = scmp.ne.s32.totalorder %s14_s7, %s593_s15  ;;  %p599_p5 = scmp.lt.s32.totalorder %s593_s15, %s593_s15 }
   0xb   :  { %p600_p6 = por %p599_p5, %p598_p4 }
   0xd   :  { %p601_p7 = pnand %p600_p6, %p594_p3 }
   0xf   :  { %604 = shalt.err (!%p601_p7)
}
  0x10   :  { %s632_s16 = smov 128   ;;  %s633_s17 = smov 8  }
  0x11   :  { %19 = dma.hbm_to_vmem [thread:$0]  %s740_s0, 256, %s14_s7, [#allocation3], %s632_s16, %s632_s16, %s633_s17  }
  0x12   :  { %627 = dma.done.wait [#allocation3], 256  }
  0x13   :  { %628 = vsyncadd [#allocation3], 4294967040  ;;  %v634_v0 = vmov 0.0   ;;  %vm635_vm0 = vmmov 0   ;;  %vm25_vm1 = vcmask 261120   ;;  %v23_v1 = vld [vmem:[#allocation2] sm:$0xff]  ;;  %v184_v7 = vlaneseq }
  0x14   :  { %562 = vmatprep.subr.mxu0 %v634_v0  ;;  %567 = vmatprep.subr.mxu1 %v634_v0  ;;  %v24_v2 = vld [vmem:[#allocation2 + $0x8] sm:$0xff]  ;;  %v172_v3 = vmul.f32 %v23_v1, %v23_v1  ;;  %v636_v8 = vmov 0   ;;  %vm463_vm2 = vcmask 1041409   ;;  %vm465_vm3 = vcmask 1042434   ;;  %s637_s0 = smov [#allocation5]  }
  0x15   :  { %564 = vmatprep.mubr.msk.f32.mxu0 %vm635_vm0, %v634_v0  ;;  %569 = vmatprep.mubr.msk.f32.mxu1 %vm635_vm0, %v634_v0  ;;  %v173_v4 = vmul.f32 %v24_v2, %v24_v2  ;;  %v661_v9 = vshrl.u32 %v184_v7, 7  ;;  %vm467_vm4 = vcmask 1043459   ;;  %vm469_vm5 = vcmask 1044484   ;;  %s545_s20 = sshll.u32 %s637_s0, 4  ;;  %s546_s20 = int_to_ptr.vmem [resolvable:$true] %s545_s20 }
  0x16   :  { %563 = vmatpush3.xpose.msk.msra.mxu0 %vm25_vm1, %v23_v1  ;;  %568 = vmatpush3.xpose.msk.msra.mxu1 %vm25_vm1, %v24_v2  ;;  %v174_v5 = vsel %vm25_vm1, %v172_v3, 0.0  ;;  %vm471_vm6 = vcmask 1045509   ;;  %vm473_vm7 = vcmask 1046534   ;;  %vm475_vm9 = vcmask 1047559   ;;  %s605_s22 = scalar_lea.vmem %s546_s20, 128  ;;  %p610_p9 = scmp.lt.s32.totalorder %s546_s20, %s546_s20 }
  0x17   :  { %175 = vadd.xlane.f32.xlu0 %v174_v5  ;;  %v177_v6 = vsel %vm25_vm1, %v173_v4, 0.0  ;;  %581 = vset.pattern.permute.xlu1 %v636_v8  ;;  %v186_v10 = vsub.s32 0, %v661_v9  ;;  %v214_v19 = vsub.s32 4, %v661_v9  ;;  %v193_v20 = vsub.s32 1, %v661_v9  ;;  %p606_p8 = scmp.ne.s32.totalorder %s546_s20, %s605_s22  ;;  %p611_p10 = scmp.lt.s32.totalorder %s605_s22, %s605_s22 }
  0x18   :  { %582 = vset.pattern.permute.xlu0 %v636_v8  ;;  %v221_v23 = vsub.s32 5, %v661_v9  ;;  %v200_v26 = vsub.s32 2, %v661_v9  ;;  %v228_v27 = vsub.s32 6, %v661_v9  ;;  %v235_v30 = vsub.s32 7, %v661_v9 }
  0x19   :  { %565 = vmatmul.mubr.msk.f32.vlgmr.msra.gmra.mrb[0].mxu0 %vm25_vm1, %v23_v1  ;;  %570 = vmatmul.mubr.msk.f32.vlgmr.msra.gmra.mrb[0].mxu1 %vm25_vm1, %v24_v2  ;;  %v207_v33 = vsub.s32 3, %v661_v9  ;;  %vm488_vm10 = vcmask 64512   ;;  %vm515_vm11 = vcmask 58368   ;;  %vm524_vm12 = vcmp.lt.s32.totalorder %v661_v9, 2  ;;  %p612_p11 = por %p611_p10, %p610_p9 }
  0x1a   :  { %vm526_vm13 = vcmask 1024  }
  0x1b   :  { %178 = vadd.xlane.f32.xlu0 %v177_v6  ;;  %p613_p12 = pnand %p612_p11, %p606_p8 }
  0xa4   :  { %v671_v40 = vpop.xlane.xlu0 %175 }
  0xa8   :  { %v673_v41 = vpop.xlane.xlu0 %178 }
  0xec   :  { %v95_v11 = vpop.f32.mrb[0].mxu0  ;;  %v168_v12 = vpop.f32.mrb[0].mxu1 }
  0xed   :  { %v180_v13 = vmul.f32 2.0, %v95_v11  ;;  %v181_v14 = vmul.f32 2.0, %v168_v12  ;;  %v566_v15 = vpop.f32.mrb[1].mxu0  ;;  %v571_v16 = vpop.f32.mrb[1].mxu1 }
  0xef   :  { %v243_v17 = vrot.slane %v181_v14, %v186_v10  ;;  %v187_v18 = vrot.slane %v180_v13, %v186_v10  ;;  %v271_v21 = vrot.slane %v181_v14, %v214_v19  ;;  %v194_v22 = vrot.slane %v180_v13, %v193_v20 }
  0xf0   :  { %v278_v24 = vrot.slane %v181_v14, %v221_v23  ;;  %v250_v25 = vrot.slane %v181_v14, %v193_v20  ;;  %v285_v28 = vrot.slane %v181_v14, %v228_v27  ;;  %v201_v29 = vrot.slane %v180_v13, %v200_v26 }
  0xf1   :  { %245 = vbcast.lane.b32.xlu0 %v243_v17, 256  ;;  %189 = vbcast.lane.b32.xlu1 %v187_v18, 256  ;;  %v292_v31 = vrot.slane %v181_v14, %v235_v30  ;;  %v257_v32 = vrot.slane %v181_v14, %v200_v26  ;;  %v208_v34 = vrot.slane %v180_v13, %v207_v33  ;;  %v331_v20 = vand.u32 127, %v184_v7 }
  0xf2   :  { %v264_v35 = vrot.slane %v181_v14, %v207_v33  ;;  %v215_v36 = vrot.slane %v180_v13, %v214_v19  ;;  %v222_v37 = vrot.slane %v180_v13, %v221_v23  ;;  %v229_v38 = vrot.slane %v180_v13, %v228_v27 }
  0xf3   :  { %v236_v39 = vrot.slane %v180_v13, %v235_v30  ;;  %v693_v23 = vsub.s32 %v331_v20, %v661_v9  ;;  %vm332_vm8 = vcmp.eq.s32.totalorder %v661_v9, %v331_v20 }
  0xf5   :  { %273 = vbcast.lane.b32.xlu0 %v271_v21, 256  ;;  %196 = vbcast.lane.b32.xlu1 %v194_v22, 256 }
  0xf9   :  { %280 = vbcast.lane.b32.xlu0 %v278_v24, 256  ;;  %252 = vbcast.lane.b32.xlu1 %v250_v25, 256 }
  0xfd   :  { %287 = vbcast.lane.b32.xlu0 %v285_v28, 256  ;;  %203 = vbcast.lane.b32.xlu1 %v201_v29, 256 }
 0x101   :  { %294 = vbcast.lane.b32.xlu0 %v292_v31, 256  ;;  %259 = vbcast.lane.b32.xlu1 %v257_v32, 256 }
 0x105   :  { %210 = vbcast.lane.b32.xlu1 %v208_v34, 256 }
 0x109   :  { %266 = vbcast.lane.b32.xlu1 %v264_v35, 256 }
 0x10d   :  { %217 = vbcast.lane.b32.xlu1 %v215_v36, 256 }
 0x111   :  { %224 = vbcast.lane.b32.xlu1 %v222_v37, 256 }
 0x115   :  { %231 = vbcast.lane.b32.xlu1 %v229_v38, 256 }
 0x119   :  { %238 = vbcast.lane.b32.xlu1 %v236_v39, 256 }
 0x163   :  { %v190_v42 = vpop.permute.xlu1 %189  ;;  %v246_v44 = vpop.permute.xlu0 %245 }
 0x164   :  { %v312_v43 = vsub.f32 %v671_v40, %v190_v42  ;;  %v320_v45 = vsub.f32 %v673_v41, %v246_v44 }
 0x166   :  { %352 = vperm.xlu1 %581, %v312_v43  }
 0x167   :  { %v197_v46 = vpop.permute.xlu1 %196  ;;  %v274_v54 = vpop.permute.xlu0 %273 }
 0x168   :  { %v313_v47 = vsub.f32 %v671_v40, %v197_v46  ;;  %v324_v61 = vsub.f32 %v673_v41, %v274_v54 }
 0x16a   :  { %376 = vperm.xlu1 %581, %v320_v45   ;;  %355 = vperm.xlu0 %582, %v313_v47  }
 0x16b   :  { %v253_v48 = vpop.permute.xlu1 %252  ;;  %v281_v59 = vpop.permute.xlu0 %280 }
 0x16c   :  { %v321_v49 = vsub.f32 %v673_v41, %v253_v48  ;;  %v325_v1 = vsub.f32 %v673_v41, %v281_v59 }
 0x16e   :  { %379 = vperm.xlu1 %581, %v321_v49  }
 0x16f   :  { %v204_v50 = vpop.permute.xlu1 %203  ;;  %v288_v63 = vpop.permute.xlu0 %287 }
 0x170   :  { %v314_v51 = vsub.f32 %v671_v40, %v204_v50  ;;  %v326_v4 = vsub.f32 %v673_v41, %v288_v63 }
 0x172   :  { %358 = vperm.xlu0 %582, %v314_v51  }
 0x173   :  { %v260_v52 = vpop.permute.xlu1 %259  ;;  %v295_v6 = vpop.permute.xlu0 %294 }
 0x174   :  { %v322_v53 = vsub.f32 %v673_v41, %v260_v52  ;;  %v327_v10 = vsub.f32 %v673_v41, %v295_v6 }
 0x176   :  { %382 = vperm.xlu1 %581, %v322_v53  }
 0x177   :  { %v211_v55 = vpop.permute.xlu1 %210 }
 0x178   :  { %v315_v56 = vsub.f32 %v671_v40, %v211_v55 }
 0x17a   :  { %361 = vperm.xlu0 %582, %v315_v56  }
 0x17b   :  { %v267_v57 = vpop.permute.xlu1 %266 }
 0x17c   :  { %v323_v58 = vsub.f32 %v673_v41, %v267_v57 }
 0x17e   :  { %385 = vperm.xlu1 %581, %v323_v58  }
 0x17f   :  { %v218_v60 = vpop.permute.xlu1 %217 }
 0x180   :  { %v316_v62 = vsub.f32 %v671_v40, %v218_v60 }
 0x182   :  { %388 = vperm.xlu1 %581, %v324_v61   ;;  %364 = vperm.xlu0 %582, %v316_v62  }
 0x183   :  { %v225_v0 = vpop.permute.xlu1 %224 }
 0x184   :  { %v317_v2 = vsub.f32 %v671_v40, %v225_v0 }
 0x186   :  { %391 = vperm.xlu1 %581, %v325_v1   ;;  %367 = vperm.xlu0 %582, %v317_v2  }
 0x187   :  { %v232_v3 = vpop.permute.xlu1 %231 }
 0x188   :  { %v318_v5 = vsub.f32 %v671_v40, %v232_v3 }
 0x18a   :  { %394 = vperm.xlu1 %581, %v326_v4   ;;  %370 = vperm.xlu0 %582, %v318_v5  }
 0x18b   :  { %v239_v8 = vpop.permute.xlu1 %238 }
 0x18c   :  { %v319_v11 = vsub.f32 %v671_v40, %v239_v8 }
 0x18e   :  { %397 = vperm.xlu1 %581, %v327_v10   ;;  %373 = vperm.xlu0 %582, %v319_v11  }
 0x1e5   :  { %v353_v12 = vpop.permute.xlu1 %352 }
 0x1e6   :  { %v402_v7 = vrot.slane %v353_v12, %v693_v23 }
 0x1e9   :  { %v377_v13 = vpop.permute.xlu1 %376  ;;  %v356_v14 = vpop.permute.xlu0 %355 }
 0x1ea   :  { %v406_v26 = vrot.slane %v356_v14, %v693_v23  ;;  %v434_v27 = vrot.slane %v377_v13, %v693_v23 }
 0x1ec   :  { %v464_v37 = vsel %vm463_vm2, %v406_v26, %v402_v7 }
 0x1ed   :  { %v380_v15 = vpop.permute.xlu1 %379 }
 0x1ee   :  { %v438_v28 = vrot.slane %v380_v15, %v693_v23 }
 0x1f0   :  { %v477_v38 = vsel %vm463_vm2, %v438_v28, %v434_v27 }
 0x1f1   :  { %v359_v16 = vpop.permute.xlu0 %358 }
 0x1f2   :  { %v410_v29 = vrot.slane %v359_v16, %v693_v23 }
 0x1f4   :  { %v466_v43 = vsel %vm465_vm3, %v410_v29, %v464_v37 }
 0x1f5   :  { %v383_v17 = vpop.permute.xlu1 %382 }
 0x1f6   :  { %v442_v30 = vrot.slane %v383_v17, %v693_v23 }
 0x1f8   :  { %v478_v44 = vsel %vm465_vm3, %v442_v30, %v477_v38 }
 0x1f9   :  { %v362_v18 = vpop.permute.xlu0 %361 }
 0x1fa   :  { %v414_v31 = vrot.slane %v362_v18, %v693_v23 }
 0x1fc   :  { %v468_v47 = vsel %vm467_vm4, %v414_v31, %v466_v43 }
 0x1fd   :  { %v386_v19 = vpop.permute.xlu1 %385 }
 0x1fe   :  { %v446_v32 = vrot.slane %v386_v19, %v693_v23 }
 0x200   :  { %v479_v48 = vsel %vm467_vm4, %v446_v32, %v478_v44 }
 0x201   :  { %v365_v21 = vpop.permute.xlu0 %364  ;;  %v389_v22 = vpop.permute.xlu1 %388 }
 0x202   :  { %v418_v33 = vrot.slane %v365_v21, %v693_v23  ;;  %v450_v34 = vrot.slane %v389_v22, %v693_v23 }
 0x204   :  { %v470_v49 = vsel %vm469_vm5, %v418_v33, %v468_v47  ;;  %v480_v50 = vsel %vm469_vm5, %v450_v34, %v479_v48 }
 0x205   :  { %v368_v24 = vpop.permute.xlu0 %367  ;;  %v392_v25 = vpop.permute.xlu1 %391 }
 0x206   :  { %v422_v39 = vrot.slane %v368_v24, %v693_v23  ;;  %v454_v42 = vrot.slane %v392_v25, %v693_v23 }
 0x208   :  { %v472_v53 = vsel %vm471_vm6, %v422_v39, %v470_v49  ;;  %v481_v54 = vsel %vm471_vm6, %v454_v42, %v480_v50 }
 0x209   :  { %v371_v35 = vpop.permute.xlu0 %370  ;;  %v395_v36 = vpop.permute.xlu1 %394 }
 0x20a   :  { %v426_v45 = vrot.slane %v371_v35, %v693_v23  ;;  %v458_v46 = vrot.slane %v395_v36, %v693_v23 }
 0x20c   :  { %v474_v57 = vsel %vm473_vm7, %v426_v45, %v472_v53  ;;  %v482_v58 = vsel %vm473_vm7, %v458_v46, %v481_v54 }
 0x20d   :  { %v374_v51 = vpop.permute.xlu0 %373  ;;  %v398_v52 = vpop.permute.xlu1 %397 }
 0x20e   :  { %v430_v55 = vrot.slane %v374_v51, %v693_v23  ;;  %v462_v56 = vrot.slane %v398_v52, %v693_v23 }
 0x210   :  { %v476_v59 = vsel %vm475_vm9, %v430_v55, %v474_v57  ;;  %v483_v60 = vsel %vm475_vm9, %v462_v56, %v482_v58 }
 0x211   :  { %v486_v61 = vsel %vm332_vm8, inf, %v476_v59  ;;  %v487_v62 = vsel %vm332_vm8, inf, %v483_v60 }
 0x212   :  { %v489_v63 = vsel %vm488_vm10, %v486_v61, inf  ;;  %v492_v0 = vsel %vm488_vm10, %v487_v62, inf }
 0x213   :  { %490 = vmin.xlane.f32.xlu0 %v489_v63  ;;  %493 = vmin.xlane.f32.xlu1 %v492_v0 }
 0x2a0   :  { %v491_v1 = vpop.xlane.xlu0 %490  ;;  %v494_v2 = vpop.xlane.xlu1 %493 }
 0x2a1   :  { %v495_v3 = vadd.f32 %v491_v1, %v671_v40  ;;  %v496_v4 = vadd.f32 %v494_v2, %v673_v41 }
 0x2a3   :  { %v497_v5 = vmax.f32 %v495_v3, 0.0  ;;  %v498_v6 = vmax.f32 %v496_v4, 0.0 }
 0x2a5   :  { %v499_v8 = vsub.f32 4.0, %v497_v5  ;;  %v500_v10 = vsub.f32 4.0, %v498_v6 }
 0x2a7   :  { %v501_v11 = vmax.f32 %v499_v8, 0.0  ;;  %v502_v12 = vmax.f32 %v500_v10, 0.0 }
 0x2a9   :  { %v508_v13 = vrot.slane %v501_v11, %v693_v23  ;;  %v512_v14 = vrot.slane %v502_v12, %v693_v23 }
 0x2ab   :  { %v513_v15 = vsel %vm463_vm2, %v512_v14, %v508_v13 }
 0x2ac   :  { %v516_v16 = vsel %vm515_vm11, %v513_v15, 0.0 }
 0x2ad   :  { %517 = vadd.xlane.f32.xlu0 %v516_v16 }
 0x33a   :  { %v518_v17 = vpop.xlane.xlu0 %517 }
 0x33b   :  { %v520_v40 = vmul.f32 0.125, %v518_v17 }
 0x33d   :  { %v525_v41 = vsel %vm524_vm12, %v520_v40, 0.0 }
 0x33e   :  { %v527_v18 = vsel %vm526_vm13, %v525_v41, 0.0 }
 0x33f   :  { %528 = vadd.xlane.f32.xlu0 %v527_v18 }
 0x3cc   :  { %v529_v19 = vpop.xlane.xlu0 %528 }
 0x3cd   :  { %v530_v20 = vrot.slane %v529_v19, 4 }
 0x3cf   :  { %v531_v21 = vadd.f32 %v530_v20, %v529_v19 }
 0x3d1   :  { %v532_v22 = vrot.slane %v531_v21, 2 }
 0x3d3   :  { %v533_v24 = vadd.f32 %v532_v22, %v531_v21 }
 0x3d5   :  { %v534_v25 = vrot.slane %v533_v24, 1 }
 0x3d7   :  { %v535_v23 = vadd.f32 %v534_v25, %v533_v24 }
 0x3d9   :  { %572 = vpush %v535_v23 }
 0x40a   :  { %s573_s21 = spop %572 }
 0x40b   :  { %v537_v26 = vstv %s573_s21 }
 0x40c   :  { %538 = vst [vmem:[#allocation5] sm:$0xff] %v537_v26 }
 0x40d   :  { %616 = shalt.err (!%p613_p12)
}
 0x40e   :  { %s617_s25 = scalar_lea.hbm %s741_s1, 128 }
 0x40f   :  { %p618_p13 = scmp.ne.s32.totalorder %s741_s1, %s617_s25  ;;  %p621_p0 = scmp.lt.u32.totalorder %s617_s25, %s741_s1 }
 0x411   :  { %p623_p1 = pnand %p621_p0, %p618_p13 }
 0x413   :  { %626 = shalt.err (!%p623_p1)
}
 0x414   :  { %548 = dma.vmem_to_hbm [thread:$0]  %s546_s20, 128, %s741_s1, [#allocation4]  }
 0x415   :  { %629 = dma.done.wait [#allocation4], 128  }
 0x416   :  { %630 = vsyncadd [#allocation4], 4294967168 }
 0x417   :  { %552 = vsyncpa [#allocation3], 1 }
 0x418   :  { %553 = vsyncpa [#allocation4], 1 }

</bundles_post_ra>
